<compile_context>
chip_gen: v6e
topology: v6e:2x2x1
jax: 0.10.0
libtpu: 0.0.40
codegen_flags: <defaults>
</compile_context>

<pallas_src>
import math

import jax
import jax.numpy as jnp
from jax.experimental import pallas as pl
from jax.experimental.pallas import tpu as pltpu


# ----------------------------- device-aware knobs ----------------------------

def _query_vmem_capacity():
    try:
        return int(getattr(pltpu.get_tpu_info(), "vmem_capacity_bytes"))
    except Exception:
        return 64 * 1024 * 1024          # conservative (v7x-sized) fallback


_VMEM_CAP = _query_vmem_capacity()
_VMEM_LIMIT = min(96 * 1024 * 1024, max(32 * 1024 * 1024, (_VMEM_CAP * 3) // 4))
_MAX_ROW_TILE = 1024 if _VMEM_CAP >= 96 * 1024 * 1024 else 512   # K=1 / VQ rows
_T_TILE = 512 if _VMEM_CAP >= 96 * 1024 * 1024 else 256          # K>1 conv T tiles
ACT_DTYPE = jnp.bfloat16                                         # inter-kernel acts


def _cp(grid_rank):
    return pltpu.CompilerParams(dimension_semantics=("parallel",) * grid_rank,
                                vmem_limit_bytes=_VMEM_LIMIT)


# ------------------------------ small helpers -------------------------------

def _round_up(x, m):
    return (x + m - 1) // m * m


def _row_tiling(rows, max_tile):
    """One full block if it fits, else max_tile-row tiles with padded rows."""
    if rows <= max_tile:
        return rows, rows
    return max_tile, _round_up(rows, max_tile)


def _pad_rows(x, rows):
    if rows == x.shape[0]:
        return x
    return jnp.concatenate(
        [x, jnp.zeros((rows - x.shape[0],) + x.shape[1:], x.dtype)], 0)


def _gelu_tanh(x):
    # tanh-approximation GELU (EUP transcendental); |err| vs erf GELU ~1e-3.
    return 0.5 * x * (1.0 + jnp.tanh(0.7978845608028654
                                     * (x + 0.044715 * x * x * x)))


# ------------------------------ fused conv kernel ----------------------------
# One kernel covers: optional Snake prologue, in-kernel zero-padded halo,
# stride-1 taps (MXU) / im2col-in-VMEM (MXU) / Cin==1 VPU MACs, bias, optional
# tanh epilogue, optional fused residual add.

def _make_conv_kernel(*, K, dilation, pad_l, pad_r, cin, t_blk, t_out, mode,
                      has_snake, has_res, act):
    need_stage = (pad_l > 0) or (pad_r > 0)

    def kernel(*refs):
        i = 0
        x_ref = refs[i]; i += 1
        if has_snake:
            a_ref, inv_ref = refs[i], refs[i + 1]; i += 2
        w_ref, b_ref = refs[i], refs[i + 1]; i += 2
        if has_res:
            res_ref = refs[i]; i += 1
        o_ref = refs[i]; i += 1
        if need_stage:
            xp_ref = refs[i]; i += 1
        if mode == "im2col":
            im_ref = refs[i]; i += 1

        x = x_ref[...]
        if has_snake:                       # Snake1d prologue (f32 math)
            xf = x.astype(jnp.float32)
            s = jnp.sin(a_ref[...] * xf)
            xs = xf + s * s * inv_ref[...]
        else:
            xs = x

        if need_stage:                      # in-kernel halo: zeroed VMEM edges
            if pad_l:
                xp_ref[0:pad_l, :] = jnp.zeros((pad_l, cin), jnp.float32)
            if pad_r:
                xp_ref[pad_l + t_blk:, :] = jnp.zeros((pad_r, cin), jnp.float32)
            xp_ref[pad_l:pad_l + t_blk, :] = xs.astype(jnp.float32)
            xp = xp_ref[...]
        else:
            xp = xs

        if mode == "vpu":                   # Cin == 1: broadcast multiply-add
            xpf = xp.astype(jnp.float32)
            acc = xpf[0:t_out, :] * w_ref[0:1, :]
            for j in range(1, K):
                s0 = j * dilation
                acc = acc + xpf[s0:s0 + t_out, :] * w_ref[j:j + 1, :]
        elif mode == "im2col":              # (Tout, K*Cin) tile -> one matmul
            for j in range(K):
                s0 = j * dilation
                im_ref[:, j * cin:(j + 1) * cin] = (
                    xp[s0:s0 + t_out, :].astype(jnp.bfloat16))
            acc = jnp.dot(im_ref[...], w_ref[...],
                          preferred_element_type=jnp.float32)
        else:                               # "taps": shift-and-matmul per tap
            acc = jnp.dot(xp[0:t_out, :].astype(jnp.bfloat16), w_ref[0],
                          preferred_element_type=jnp.float32)
            for j in range(1, K):
                s0 = j * dilation
                acc = acc + jnp.dot(xp[s0:s0 + t_out, :].astype(jnp.bfloat16),
                                    w_ref[j], preferred_element_type=jnp.float32)

        acc = acc + b_ref[...]
        if act == "tanh":
            acc = jnp.tanh(acc)
        if has_res:
            acc = acc + res_ref[...].astype(jnp.float32)
        o_ref[...] = acc.astype(o_ref.dtype)

    return kernel


def _conv_call_batched(x, wp, snake, res, act, out_dtype, *, dilation, pad_l, pad_r):
    """x: (G, Tin, Cin); grid over G, whole Tin per program."""
    G, Tin, Cin = x.shape
    K, Cout, mode = wp["K"], wp["cout"], wp["mode"]
    halo = dilation * (K - 1)
    Tout = Tin + pad_l + pad_r - halo
    need_stage = (pad_l > 0) or (pad_r > 0)
    kernel = _make_conv_kernel(K=K, dilation=dilation, pad_l=pad_l, pad_r=pad_r,
                               cin=Cin, t_blk=Tin, t_out=Tout, mode=mode,
                               has_snake=snake is not None,
                               has_res=res is not None, act=act)
    in_specs = [pl.BlockSpec((None, Tin, Cin), lambda g: (g, 0, 0))]
    args = [x]
    if snake is not None:
        in_specs += [pl.BlockSpec((1, Cin), lambda g: (0, 0)),
                     pl.BlockSpec((1, Cin), lambda g: (0, 0))]
        args += [snake["a"], snake["inv"]]
    if wp["w"].ndim == 3:
        in_specs.append(pl.BlockSpec(wp["w"].shape, lambda g: (0, 0, 0)))
    else:
        in_specs.append(pl.BlockSpec(wp["w"].shape, lambda g: (0, 0)))
    in_specs.append(pl.BlockSpec((1, Cout), lambda g: (0, 0)))
    args += [wp["w"], wp["b"]]
    if res is not None:
        in_specs.append(pl.BlockSpec((None, Tout, Cout), lambda g: (g, 0, 0)))
        args.append(res)
    scratch = []
    if need_stage:
        scratch.append(pltpu.VMEM((Tin + pad_l + pad_r, Cin), jnp.float32))
    if mode == "im2col":
        scratch.append(pltpu.VMEM((Tout, K * Cin), jnp.bfloat16))
    return pl.pallas_call(
        kernel,
        out_shape=jax.ShapeDtypeStruct((G, Tout, Cout), out_dtype),
        grid=(G,),
        in_specs=in_specs,
        out_specs=pl.BlockSpec((None, Tout, Cout), lambda g: (g, 0, 0)),
        scratch_shapes=scratch,
        compiler_params=_cp(1),
    )(*args)


def _conv_call_rows(x2d, wp, snake, res2d, act, out_dtype):
    """K=1 convs: flatten (B,T) into rows, row-tiled grid (lane-dense, pipelined)."""
    rows, Cin = x2d.shape
    Cout = wp["cout"]
    tile, rows_p = _row_tiling(rows, _MAX_ROW_TILE)
    xb = _pad_rows(x2d, rows_p)
    resb = _pad_rows(res2d, rows_p) if res2d is not None else None
    kernel = _make_conv_kernel(K=1, dilation=1, pad_l=0, pad_r=0, cin=Cin,
                               t_blk=tile, t_out=tile, mode="taps",
                               has_snake=snake is not None,
                               has_res=res2d is not None, act=act)
    in_specs = [pl.BlockSpec((tile, Cin), lambda i: (i, 0))]
    args = [xb]
    if snake is not None:
        in_specs += [pl.BlockSpec((1, Cin), lambda i: (0, 0)),
                     pl.BlockSpec((1, Cin), lambda i: (0, 0))]
        args += [snake["a"], snake["inv"]]
    in_specs += [pl.BlockSpec(wp["w"].shape, lambda i: (0, 0, 0)),
                 pl.BlockSpec((1, Cout), lambda i: (0, 0))]
    args += [wp["w"], wp["b"]]
    if resb is not None:
        in_specs.append(pl.BlockSpec((tile, Cout), lambda i: (i, 0)))
        args.append(resb)
    out = pl.pallas_call(
        kernel,
        out_shape=jax.ShapeDtypeStruct((rows_p, Cout), out_dtype),
        grid=(rows_p // tile,),
        in_specs=in_specs,
        out_specs=pl.BlockSpec((tile, Cout), lambda i: (i, 0)),
        compiler_params=_cp(1),
    )(*args)
    return out[:rows] if rows_p != rows else out


def _conv_call_tiled(x, wp, snake, act, out_dtype, *, dilation, padding, tile):
    """Long-T K>1 convs: T-tiled grid with a small duplicated halo per tile."""
    B, T, Cin = x.shape
    K, Cout = wp["K"], wp["cout"]
    halo = dilation * (K - 1)
    Tout = T + 2 * padding - halo
    nt = -(-Tout // tile)
    Lp = nt * tile + halo
    xp = jnp.pad(x, ((0, 0), (padding, Lp - padding - T), (0, 0)))
    gidx = (jnp.arange(nt)[:, None] * tile
            + jnp.arange(tile + halo)[None, :]).reshape(-1)
    xt = jnp.take(xp, gidx, axis=1).reshape(B * nt, tile + halo, Cin)
    out = _conv_call_batched(xt, wp, snake, None, act, out_dtype,
                             dilation=dilation, pad_l=0, pad_r=0)
    out = out.reshape(B, nt * tile, Cout)
    return out[:, :Tout, :]


def pallas_conv1d(x, wp, *, dilation=1, padding=0, snake=None, res=None,
                  act="none", out_dtype=None):
    """Stride-1 nn.Conv1d on channels-last x:(B,T,Cin) with optional fused
    Snake prologue / residual epilogue.  wp from _pack_conv*."""
    if out_dtype is None:
        out_dtype = ACT_DTYPE
    B, T, Cin = x.shape
    assert Cin == wp["cin"], (Cin, wp["cin"])
    K, Cout = wp["K"], wp["cout"]
    if K == 1 and padding == 0:
        res2d = res.reshape(B * T, Cout) if res is not None else None
        out = _conv_call_rows(x.reshape(B * T, Cin), wp, snake, res2d, act, out_dtype)
        return out.reshape(B, T, Cout)
    halo = dilation * (K - 1)
    Tout = T + 2 * padding - halo
    if res is None and Tout > 2 * _T_TILE:
        return _conv_call_tiled(x, wp, snake, act, out_dtype,
                                dilation=dilation, padding=padding, tile=_T_TILE)
    return _conv_call_batched(x, wp, snake, res, act, out_dtype,
                              dilation=dilation, pad_l=padding, pad_r=padding)


def conv1d_strided(x, wp, snake_g, stride, padding, out_dtype):
    """Strided Conv1d (K=2*stride) via polyphase channel regrouping; Snake is
    fused into the kernel with channel-tiled alpha (snake(0)=0 so the pad is
    exact)."""
    B, T, Cin = x.shape
    xp = jnp.pad(x, ((0, 0), (padding, padding), (0, 0)))
    Lp = xp.shape[1]
    K = 2 * stride
    Tout = (Lp - K) // stride + 1
    xg = xp[:, :(Tout + 1) * stride, :].reshape(B, Tout + 1, stride * Cin)
    return pallas_conv1d(xg, wp, snake=snake_g, out_dtype=out_dtype)


def conv_transpose1d(x, wp, snake, stride, padding, out_dtype):
    """nn.ConvTranspose1d (K=2*stride) via polyphase decomposition: one
    stride-1 K=2 conv whose output channels carry the upsample phases; the
    (1,1) pad is done in-kernel."""
    B, T, _ = x.shape
    yph = pallas_conv1d(x, wp, padding=1, snake=snake, out_dtype=out_dtype)
    cout = yph.shape[-1] // stride
    y = yph.reshape(B, (T + 1) * stride, cout)
    return y[:, padding:(T + 1) * stride - padding, :]


# ------------------------- fused ConvNeXt block kernel ------------------------

def _make_convnext_kernel(*, T, C, inter, chunk):
    def kernel(x_ref, dww_ref, dwb_ref, lnw_ref, lnb_ref, w1_ref, b1_ref,
               w2_ref, b2_ref, g_ref, o_ref, xp_ref):
        x32 = x_ref[...].astype(jnp.float32)
        xp_ref[0:3, :] = jnp.zeros((3, C), jnp.float32)
        xp_ref[3 + T:, :] = jnp.zeros((3, C), jnp.float32)
        xp_ref[3:3 + T, :] = x32
        xp = xp_ref[...]
        h = xp[0:T, :] * dww_ref[0:1, :]
        for j in range(1, 7):
            h = h + xp[j:j + T, :] * dww_ref[j:j + 1, :]
        h = h + dwb_ref[...]
        mu = jnp.mean(h, axis=-1, keepdims=True)
        var = jnp.mean((h - mu) ** 2, axis=-1, keepdims=True)
        xn = (h - mu) * jax.lax.rsqrt(var + 1e-6)
        xn = xn * lnw_ref[...] + lnb_ref[...]
        xnb = xn.astype(jnp.bfloat16)
        y = jnp.zeros((T, C), jnp.float32)
        for c0 in range(0, inter, chunk):        # chunked MLP intermediate
            z = jnp.dot(xnb, w1_ref[:, c0:c0 + chunk],
                        preferred_element_type=jnp.float32)
            z = _gelu_tanh(z + b1_ref[:, c0:c0 + chunk])
            y = y + jnp.dot(z.astype(jnp.bfloat16), w2_ref[c0:c0 + chunk, :],
                            preferred_element_type=jnp.float32)
        y = y + b2_ref[...]
        o_ref[...] = (x32 + g_ref[...] * y).astype(o_ref.dtype)
    return kernel


def convnext_block(x, p):
    """Fused ConvNeXtBlock (dwconv + LN + MLP + layer-scale + residual)."""
    # TODO(synk): T-tile this kernel (halo=3 per side) for very long semantic
    # sequences; semantic-token T is modest so grid over B is sufficient here.
    B, T, C = x.shape
    inter = p["w1"].shape[1]
    chunk = 512 if inter % 512 == 0 else inter
    kernel = _make_convnext_kernel(T=T, C=C, inter=inter, chunk=chunk)
    return pl.pallas_call(
        kernel,
        out_shape=jax.ShapeDtypeStruct((B, T, C), ACT_DTYPE),
        grid=(B,),
        in_specs=[pl.BlockSpec((None, T, C), lambda b: (b, 0, 0)),
                  pl.BlockSpec((7, C), lambda b: (0, 0)),
                  pl.BlockSpec((1, C), lambda b: (0, 0)),
                  pl.BlockSpec((1, C), lambda b: (0, 0)),
                  pl.BlockSpec((1, C), lambda b: (0, 0)),
                  pl.BlockSpec((C, inter), lambda b: (0, 0)),
                  pl.BlockSpec((1, inter), lambda b: (0, 0)),
                  pl.BlockSpec((inter, C), lambda b: (0, 0)),
                  pl.BlockSpec((1, C), lambda b: (0, 0)),
                  pl.BlockSpec((1, C), lambda b: (0, 0))],
        out_specs=pl.BlockSpec((None, T, C), lambda b: (b, 0, 0)),
        scratch_shapes=[pltpu.VMEM((T + 6, C), jnp.float32)],
        compiler_params=_cp(1),
    )(x, p["dw_w"], p["dw_b"], p["ln_w"], p["ln_b"],
      p["w1"], p["b1"], p["w2"], p["b2"], p["gamma"])


# ------------------------------ fused VQ kernel -------------------------------
# in_proj -> L2-normalised nearest code -> out_proj, all in one kernel.
# cb_proj = codebook @ W_out^T is precomputed so the lane-dense projected z_q
# is emitted directly.

def _make_vq_kernel(*, Kc):
    def kernel(z_ref, wi_ref, bi_ref, cbt_ref, cb_ref, cbp_ref, bo_ref,
               zq_ref, idx_ref, ze_ref, zqraw_ref):
        z = z_ref[...]
        ze = jnp.dot(z.astype(jnp.bfloat16), wi_ref[...],
                     preferred_element_type=jnp.float32) + bi_ref[...]
        en = ze * jax.lax.rsqrt(jnp.maximum(jnp.sum(ze * ze, -1, keepdims=True),
                                            1e-12))
        dots = jnp.dot(en.astype(jnp.bfloat16), cbt_ref[...],
                       preferred_element_type=jnp.float32)          # (tm, K)
        maxv = jnp.max(dots, axis=-1, keepdims=True)
        iota = jax.lax.broadcasted_iota(jnp.int32, dots.shape, 1)
        idx = jnp.min(jnp.where(dots >= maxv, iota, Kc), axis=-1, keepdims=True)
        idx = jnp.minimum(idx, Kc - 1).astype(jnp.int32)            # NaN-safe
        onehot = (idx == iota).astype(jnp.float32)
        zq_raw = jnp.dot(onehot, cb_ref[...], preferred_element_type=jnp.float32)
        zq_out = jnp.dot(onehot, cbp_ref[...],
                         preferred_element_type=jnp.float32) + bo_ref[...]
        zq_ref[...] = zq_out.astype(zq_ref.dtype)
        idx_ref[...] = idx
        ze_ref[...] = ze
        zqraw_ref[...] = zq_raw
    return kernel


def pallas_vq_layer(z, p, *, out_dtype=jnp.float32):
    """z:(B,T,Din) -> (z_q_out (B,T,Dout), idx (B,T), z_e (B,T,D), z_q_raw)."""
    B, T, Din = z.shape
    rows = B * T
    Kc, D = p["cb"].shape
    Dout = p["cbp"].shape[1]
    tile, rows_p = _row_tiling(rows, _MAX_ROW_TILE)
    zf = _pad_rows(z.reshape(rows, Din), rows_p)
    outs = pl.pallas_call(
        _make_vq_kernel(Kc=Kc),
        out_shape=(jax.ShapeDtypeStruct((rows_p, Dout), out_dtype),
                   jax.ShapeDtypeStruct((rows_p, 1), jnp.int32),
                   jax.ShapeDtypeStruct((rows_p, D), jnp.float32),
                   jax.ShapeDtypeStruct((rows_p, D), jnp.float32)),
        grid=(rows_p // tile,),
        in_specs=[pl.BlockSpec((tile, Din), lambda i: (i, 0)),
                  pl.BlockSpec((Din, D), lambda i: (0, 0)),
                  pl.BlockSpec((1, D), lambda i: (0, 0)),
                  pl.BlockSpec((D, Kc), lambda i: (0, 0)),
                  pl.BlockSpec((Kc, D), lambda i: (0, 0)),
                  pl.BlockSpec((Kc, Dout), lambda i: (0, 0)),
                  pl.BlockSpec((1, Dout), lambda i: (0, 0))],
        out_specs=(pl.BlockSpec((tile, Dout), lambda i: (i, 0)),
                   pl.BlockSpec((tile, 1), lambda i: (i, 0)),
                   pl.BlockSpec((tile, D), lambda i: (i, 0)),
                   pl.BlockSpec((tile, D), lambda i: (i, 0))),
        compiler_params=_cp(1),
    )(zf, p["wi"], p["bi"], p["cbt_n"], p["cb"], p["cbp"], p["bo"])
    zq_out, idx, ze, zqraw = outs
    return (zq_out[:rows].reshape(B, T, Dout),
            idx[:rows, 0].reshape(B, T),
            ze[:rows].reshape(B, T, D),
            zqraw[:rows].reshape(B, T, D))


# ----------------------------- model configuration ---------------------------
# Small-but-structurally-faithful DualCodec config; 1024-channel semantic
# interface and 2048-dim ConvNeXt MLP are kept; latent_dim == 1024 so the
# semantic latent can be subtracted from the DAC latent.
CFG = dict(
    encoder_dim=8, encoder_rates=(2, 2), latent_dim=1024,
    decoder_dim=16, decoder_rates=(2, 2),
    n_codebooks=2, codebook_size=128, codebook_dim=8,
    semantic_codebook_size=256, semantic_codebook_dim=8,
    convnext_dim=64, convnext_intermediate=2048, convnext_layers=1,
    sample_rate=24000, semantic_channels=1024,
)


# ------------------------------ parameter init --------------------------------
# (torch-style layouts; weight_norm(Conv1d) == Conv1d numerically at init.
#  TODO(synk): for trained checkpoints fold g * v / ||v|| before packing.)

class _Keys:
    def __init__(self, seed):
        self._key = jax.random.PRNGKey(seed)

    def __call__(self):
        self._key, sub = jax.random.split(self._key)
        return sub


def _normal(kg, shape, scale=0.05):
    return scale * jax.random.normal(kg(), shape, dtype=jnp.float32)


def _conv_p(kg, cout, cin, k):
    return {"w": _normal(kg, (cout, cin, k)), "b": _normal(kg, (cout,), 0.01)}


def _convt_p(kg, cin, cout, k):
    return {"w": _normal(kg, (cin, cout, k)), "b": _normal(kg, (cout,), 0.01)}


def _snake_p(c):
    return jnp.ones((1, c), jnp.float32)


def _res_unit_p(kg, c):
    return {"alpha1": _snake_p(c), "conv1": _conv_p(kg, c, c, 7),
            "alpha2": _snake_p(c), "conv2": _conv_p(kg, c, c, 1)}


def _convnext_p(kg, dim, inter):
    return {"dw_w": _normal(kg, (7, dim)), "dw_b": _normal(kg, (dim,), 0.01),
            "ln_w": jnp.ones((dim,), jnp.float32),
            "ln_b": jnp.zeros((dim,), jnp.float32),
            "w1": _normal(kg, (dim, inter)), "b1": _normal(kg, (inter,), 0.01),
            "w2": _normal(kg, (inter, dim)), "b2": _normal(kg, (dim,), 0.01),
            "gamma": jnp.full((dim,), 1e-6, jnp.float32)}


def _vq_layer_p(kg, input_dim, cb_size, cb_dim):
    return {"in_proj": _conv_p(kg, cb_dim, input_dim, 1),
            "out_proj": _conv_p(kg, input_dim, cb_dim, 1),
            "codebook": _normal(kg, (cb_size, cb_dim), 1.0)}


def init_dualcodec_params(seed=0):
    kg = _Keys(seed)
    c = CFG
    convnext_encoder = {
        "in": _conv_p(kg, c["convnext_dim"], c["semantic_channels"], 1),
        "blocks": [_convnext_p(kg, c["convnext_dim"], c["convnext_intermediate"])
                   for _ in range(c["convnext_layers"])]}
    semantic_vq = [_vq_layer_p(kg, c["convnext_dim"], c["semantic_codebook_size"],
                               c["semantic_codebook_dim"])]
    convnext_decoder = {
        "blocks": [_convnext_p(kg, c["convnext_dim"], c["convnext_intermediate"])
                   for _ in range(c["convnext_layers"])],
        "out": _conv_p(kg, c["semantic_channels"], c["convnext_dim"], 1)}
    d = c["encoder_dim"]
    enc = {"conv_in": _conv_p(kg, d, 1, 7), "blocks": []}
    for stride in c["encoder_rates"]:
        d *= 2
        enc["blocks"].append({"res": [_res_unit_p(kg, d // 2) for _ in range(3)],
                              "alpha": _snake_p(d // 2),
                              "conv": _conv_p(kg, d, d // 2, 2 * stride)})
    enc["alpha"] = _snake_p(d)
    enc["conv_out"] = _conv_p(kg, c["latent_dim"], d, 3)
    quantizer = [_vq_layer_p(kg, c["latent_dim"], c["codebook_size"], c["codebook_dim"])
                 for _ in range(c["n_codebooks"])]
    dec = {"conv_in": _conv_p(kg, c["decoder_dim"], c["latent_dim"], 7), "blocks": []}
    ch = c["decoder_dim"]
    out_dim = ch
    for i, stride in enumerate(c["decoder_rates"]):
        in_dim = ch // (2 ** i)
        out_dim = ch // (2 ** (i + 1))
        dec["blocks"].append({"alpha": _snake_p(in_dim),
                              "convt": _convt_p(kg, in_dim, out_dim, 2 * stride),
                              "res": [_res_unit_p(kg, out_dim) for _ in range(3)]})
    dec["alpha"] = _snake_p(out_dim)
    dec["conv_out"] = _conv_p(kg, 1, out_dim, 7)
    return {"convnext_encoder": convnext_encoder, "semantic_vq": semantic_vq,
            "convnext_decoder": convnext_decoder,
            "dac": {"encoder": enc, "quantizer": quantizer, "decoder": dec}}


# --------------------------- one-time parameter packing -----------------------

def _pack_conv(p):
    w = p["w"]                                  # torch (Cout, Cin, K)
    cout, cin, k = w.shape
    wt = jnp.transpose(w, (2, 1, 0))            # (K, Cin, Cout) tap-major
    if k == 1:
        mode, wpk = "taps", wt.astype(jnp.bfloat16)
    elif cin == 1:
        mode, wpk = "vpu", wt.reshape(k, cout).astype(jnp.float32)
    elif cin < 128:
        mode, wpk = "im2col", wt.reshape(k * cin, cout).astype(jnp.bfloat16)
    else:
        mode, wpk = "taps", wt.astype(jnp.bfloat16)
    return {"w": wpk, "b": p["b"].reshape(1, cout).astype(jnp.float32),
            "K": k, "cin": cin, "cout": cout, "mode": mode}


def _pack_conv_strided(p, stride):
    w = p["w"]                                  # (Cout, Cin, K == 2*stride)
    cout, cin, k = w.shape
    s = stride
    assert k == 2 * s
    cin_g = s * cin
    wt = jnp.transpose(w, (2, 1, 0)).reshape(2, cin_g, cout)
    if cin_g < 128:
        mode, wpk = "im2col", wt.reshape(2 * cin_g, cout).astype(jnp.bfloat16)
    else:
        mode, wpk = "taps", wt.astype(jnp.bfloat16)
    return {"w": wpk, "b": p["b"].reshape(1, cout).astype(jnp.float32),
            "K": 2, "cin": cin_g, "cout": cout, "mode": mode}


def _pack_convt(p, stride):
    w = p["w"]                                  # torch (Cin, Cout, K == 2*stride)
    cin, cout, k = w.shape
    s = stride
    assert k == 2 * s
    wc0 = jnp.transpose(w[:, :, s:2 * s], (0, 2, 1)).reshape(cin, s * cout)
    wc1 = jnp.transpose(w[:, :, 0:s], (0, 2, 1)).reshape(cin, s * cout)
    wt = jnp.stack([wc0, wc1], 0)               # (2, Cin, s*Cout)
    cout_g = s * cout
    if cin == 1:
        mode, wpk = "vpu", wt.reshape(2, cout_g).astype(jnp.float32)
    elif cin < 128:
        mode, wpk = "im2col", wt.reshape(2 * cin, cout_g).astype(jnp.bfloat16)
    else:
        mode, wpk = "taps", wt.astype(jnp.bfloat16)
    b = jnp.tile(p["b"].reshape(1, cout), (s, 1)).reshape(1, cout_g)
    return {"w": wpk, "b": b.astype(jnp.float32),
            "K": 2, "cin": cin, "cout": cout_g, "mode": mode}


def _pack_alpha(alpha):
    c = alpha.shape[-1]
    a = alpha.reshape(1, c).astype(jnp.float32)
    return {"a": a, "inv": 1.0 / (a + 1e-9)}    # hoisted reciprocal


def _pack_alpha_grouped(alpha, s):
    p = _pack_alpha(alpha)
    return {"a": jnp.tile(p["a"], (1, s)), "inv": jnp.tile(p["inv"], (1, s))}


def _pack_convnext(p):
    dim = p["ln_w"].shape[0]
    inter = p["w1"].shape[1]
    return {"dw_w": p["dw_w"].astype(jnp.float32),
            "dw_b": p["dw_b"].reshape(1, dim).astype(jnp.float32),
            "ln_w": p["ln_w"].reshape(1, dim), "ln_b": p["ln_b"].reshape(1, dim),
            "w1": p["w1"].astype(jnp.bfloat16), "b1": p["b1"].reshape(1, inter),
            "w2": p["w2"].astype(jnp.bfloat16), "b2": p["b2"].reshape(1, dim),
            "gamma": p["gamma"].reshape(1, dim)}


def _pack_vq_layer(p):
    cb = p["codebook"].astype(jnp.float32)                       # (K, D) raw
    cbn = cb * jax.lax.rsqrt(jnp.maximum(jnp.sum(cb * cb, -1, keepdims=True), 1e-12))
    wi = p["in_proj"]["w"][:, :, 0]                              # (D, Din)
    wo = p["out_proj"]["w"][:, :, 0]                             # (Dout, D)
    return {"wi": jnp.transpose(wi).astype(jnp.bfloat16),        # (Din, D)
            "bi": p["in_proj"]["b"].reshape(1, -1).astype(jnp.float32),
            "cbt_n": jnp.transpose(cbn).astype(jnp.bfloat16),    # (D, K) normalised
            "cb": cb,
            "cbp": cb @ jnp.transpose(wo),                       # (K, Dout) = cb @ W_out^T
            "bo": p["out_proj"]["b"].reshape(1, -1).astype(jnp.float32)}


def _pack_res_unit(p):
    return {"alpha1": _pack_alpha(p["alpha1"]), "conv1": _pack_conv(p["conv1"]),
            "alpha2": _pack_alpha(p["alpha2"]), "conv2": _pack_conv(p["conv2"])}


def pack_dualcodec_params(params):
    c = CFG
    enc = params["dac"]["encoder"]
    enc_p = {"conv_in": _pack_conv(enc["conv_in"]),
             "alpha": _pack_alpha(enc["alpha"]),
             "conv_out": _pack_conv(enc["conv_out"]), "blocks": []}
    for blk, stride in zip(enc["blocks"], c["encoder_rates"]):
        enc_p["blocks"].append({"res": [_pack_res_unit(r) for r in blk["res"]],
                                "alpha_g": _pack_alpha_grouped(blk["alpha"], stride),
                                "conv": _pack_conv_strided(blk["conv"], stride)})
    dec = params["dac"]["decoder"]
    dec_p = {"conv_in": _pack_conv(dec["conv_in"]),
             "alpha": _pack_alpha(dec["alpha"]),
             "conv_out": _pack_conv(dec["conv_out"]), "blocks": []}
    for blk, stride in zip(dec["blocks"], c["decoder_rates"]):
        dec_p["blocks"].append({"alpha": _pack_alpha(blk["alpha"]),
                                "convt": _pack_convt(blk["convt"], stride),
                                "res": [_pack_res_unit(r) for r in blk["res"]]})
    return {
        "convnext_encoder": {
            "in": _pack_conv(params["convnext_encoder"]["in"]),
            "blocks": [_pack_convnext(b) for b in params["convnext_encoder"]["blocks"]]},
        "semantic_vq": [_pack_vq_layer(v) for v in params["semantic_vq"]],
        "convnext_decoder": {
            "blocks": [_pack_convnext(b) for b in params["convnext_decoder"]["blocks"]],
            "out": _pack_conv(params["convnext_decoder"]["out"])},
        "dac": {"encoder": enc_p,
                "quantizer": [_pack_vq_layer(v) for v in params["dac"]["quantizer"]],
                "decoder": dec_p},
    }


# -------------------------------- model forward -------------------------------

def residual_unit(p, x, dilation):
    y = pallas_conv1d(x, p["conv1"], dilation=dilation,
                      padding=((7 - 1) * dilation) // 2, snake=p["alpha1"])
    pad = (x.shape[1] - y.shape[1]) // 2
    if pad > 0:
        x = x[:, pad:-pad, :]
    return pallas_conv1d(y, p["conv2"], snake=p["alpha2"], res=x)


def dac_encoder(p, x, rates):
    x = pallas_conv1d(x, p["conv_in"], padding=3)
    for blk, stride in zip(p["blocks"], rates):
        for dil, ru in zip((1, 3, 9), blk["res"]):
            x = residual_unit(ru, x, dil)
        x = conv1d_strided(x, blk["conv"], blk["alpha_g"], stride,
                           math.ceil(stride / 2), ACT_DTYPE)
    return pallas_conv1d(x, p["conv_out"], padding=1, snake=p["alpha"],
                         out_dtype=jnp.float32)


def dac_decoder(p, x, rates):
    x = pallas_conv1d(x, p["conv_in"], padding=3)
    for blk, stride in zip(p["blocks"], rates):
        x = conv_transpose1d(x, blk["convt"], blk["alpha"], stride,
                             math.ceil(stride / 2), ACT_DTYPE)
        for dil, ru in zip((1, 3, 9), blk["res"]):
            x = residual_unit(ru, x, dil)
    return pallas_conv1d(x, p["conv_out"], padding=3, snake=p["alpha"],
                         act="tanh", out_dtype=jnp.float32)


def vq_layer_forward(p, z):
    zq_out, idx, ze, zq_raw = pallas_vq_layer(z, p, out_dtype=jnp.float32)
    commitment = jnp.mean((ze - zq_raw) ** 2)        # forward value only
    return zq_out, commitment, commitment, idx, ze


def rvq_forward(p_layers, z, n_quantizers=None):
    nq = len(p_layers) if n_quantizers is None else max(1, min(n_quantizers,
                                                               len(p_layers)))
    residual = z.astype(jnp.float32)
    z_q = jnp.zeros_like(residual)
    commit, cb = 0.0, 0.0
    codes, latents = [], []
    first_layer_quantized = None
    for i, p in enumerate(p_layers[:nq]):
        zqi, ci, cbi, idx, zei = vq_layer_forward(p, residual)
        z_q = z_q + zqi
        residual = residual - zqi
        commit = commit + ci
        cb = cb + cbi
        codes.append(idx)
        latents.append(jnp.transpose(zei, (0, 2, 1)))
        if i == 0:
            first_layer_quantized = zqi
    codes = jnp.stack(codes, axis=1)              # (B, n_q, T)
    latents = jnp.concatenate(latents, axis=1)    # (B, n_q * cb_dim, T)
    return z_q, codes, latents, commit, cb, first_layer_quantized


def dac_forward(p, audio_data, n_quantizers, subtracted_latent):
    """DAC forward with the DualCodec residual-latent ('subtracted_latent') path."""
    length = audio_data.shape[-1]
    hop = math.prod(CFG["encoder_rates"])
    right_pad = math.ceil(length / hop) * hop - length
    audio = jnp.pad(audio_data, ((0, 0), (0, 0), (0, right_pad)))
    x = jnp.transpose(audio, (0, 2, 1))                        # (B, T, 1)
    z = dac_encoder(p["encoder"], x, CFG["encoder_rates"])     # (B, T', 1024) f32
    # TODO(synk): the DAC subclass source was not provided; the residual acoustic
    # coding below (quantize z - semantic, add semantic back before decode)
    # follows the DualCodec paper / repo description.
    z_res = z - subtracted_latent
    z_q, codes, latents, commit, cb, _ = rvq_forward(p["quantizer"], z_res, n_quantizers)
    z_q = z_q + subtracted_latent
    audio_hat = dac_decoder(p["decoder"], z_q, CFG["decoder_rates"])
    audio_hat = jnp.transpose(audio_hat, (0, 2, 1))[..., :length]
    return {"audio": audio_hat,
            "z": jnp.transpose(z_q, (0, 2, 1)),
            "codes": codes,
            "latents": latents,
            "vq/commitment_loss": commit,
            "vq/codebook_loss": cb}


def dualcodec_forward(params, audio_data, semantic_repr, n_quantizers=None):
    """DualCodec.forward, eval-mode (bypass_quantize=False, no quantizer dropout)."""
    sem = jnp.transpose(semantic_repr, (0, 2, 1))              # (B, T, 1024)
    p_enc = params["convnext_encoder"]
    sem = pallas_conv1d(sem, p_enc["in"])                      # WNConv1d(1024, dim, 1)
    for blk in p_enc["blocks"]:
        sem = convnext_block(sem, blk)
    (sem_q, sem_codes, sem_latents, sem_commit, sem_cb,
     _first_layer_q) = rvq_forward(params["semantic_vq"], sem)
    semantic = sem_q                                           # decode_semantic_for_codec=True
    p_dec = params["convnext_decoder"]
    for blk in p_dec["blocks"]:
        semantic = convnext_block(semantic, blk)
    semantic = pallas_conv1d(semantic, p_dec["out"], out_dtype=jnp.float32)
    bypass_quantize = False                                    # eval mode
    nq = None if n_quantizers is None else n_quantizers - 1
    acoustic_edict = dac_forward(params["dac"], audio_data, nq, semantic)
    semantic_edict = {"x": jnp.transpose(semantic, (0, 2, 1)),
                      "codes": sem_codes,
                      "latents": sem_latents,
                      "penalty": sem_commit,
                      "vq/codebook_loss": sem_cb,
                      "metrics": {},
                      "bypassed_quantize": bypass_quantize}
    return acoustic_edict, semantic_edict


# --------------------------- numerical self checks ----------------------------

def _run_self_checks():
    ks = jax.random.split(jax.random.PRNGKey(42), 12)

    def ref_conv(x, w, b, pad, dil):
        y = jax.lax.conv_general_dilated(
            x, w, window_strides=(1,), padding=[(pad, pad)], rhs_dilation=(dil,),
            dimension_numbers=("NWC", "OIW", "NWC"),
            precision=jax.lax.Precision.HIGHEST)
        return y + b.reshape(1, 1, -1)

    def rel_err(a, b):
        return float(jnp.max(jnp.abs(a.astype(jnp.float32) - b))
                     / (jnp.max(jnp.abs(b)) + 1e-6))

    # (1) im2col mode, whole-T grid, in-kernel padding, dilation.
    x = jax.random.normal(ks[0], (2, 48, 16), jnp.float32)
    w = 0.05 * jax.random.normal(ks[1], (24, 16, 7), jnp.float32)
    b = 0.01 * jax.random.normal(ks[2], (24,), jnp.float32)
    out = pallas_conv1d(x, _pack_conv({"w": w, "b": b}), dilation=3, padding=9,
                        out_dtype=jnp.float32)
    assert rel_err(out, ref_conv(x, w, b, 9, 3)) < 5e-2

    # (2) Cin=1 VPU path with in-kernel padding.
    x = jax.random.normal(ks[3], (2, 40, 1), jnp.float32)
    w = 0.05 * jax.random.normal(ks[4], (8, 1, 7), jnp.float32)
    b = 0.01 * jax.random.normal(ks[5], (8,), jnp.float32)
    out = pallas_conv1d(x, _pack_conv({"w": w, "b": b}), padding=3,
                        out_dtype=jnp.float32)
    assert rel_err(out, ref_conv(x, w, b, 3, 1)) < 5e-2

    # (3) long-T tiled/halo path (ragged last tile).
    T = 2 * _T_TILE + 195
    x = jax.random.normal(ks[6], (1, T, 16), jnp.float32)
    w = 0.05 * jax.random.normal(ks[7], (32, 16, 7), jnp.float32)
    b = jnp.zeros((32,), jnp.float32)
    out = pallas_conv1d(x, _pack_conv({"w": w, "b": b}), padding=3,
                        out_dtype=jnp.float32)
    assert rel_err(out, ref_conv(x, w, b, 3, 1)) < 5e-2

    # (4) K=1 flattened-row path with fused Snake prologue + residual epilogue.
    x = jax.random.normal(ks[8], (2, 33, 16), jnp.float32)
    w = 0.05 * jax.random.normal(ks[9], (24, 16, 1), jnp.float32)
    b = 0.01 * jax.random.normal(ks[10], (24,), jnp.float32)
    alpha = 0.5 + jnp.abs(jax.random.normal(ks[11], (1, 16), jnp.float32))
    res = jnp.ones((2, 33, 24), jnp.float32)
    out = pallas_conv1d(x, _pack_conv({"w": w, "b": b}),
                        snake=_pack_alpha(alpha), res=res, out_dtype=jnp.float32)
    sn = x + jnp.sin(alpha * x) ** 2 / (alpha + 1e-9)
    assert rel_err(out, ref_conv(sn, w, b, 0, 1) + res) < 5e-2


# ------------------------------------ main ------------------------------------

if __name__ == "__main__":
    _run_self_checks()

    params = pack_dualcodec_params(init_dualcodec_params(seed=0))

    key = jax.random.PRNGKey(0)
    k_audio, k_sem = jax.random.split(key)
    B = 2
    hop = math.prod(CFG["encoder_rates"])
    T_sem = 8
    T_audio = T_sem * hop
    audio_data = 0.1 * jax.random.normal(k_audio, (B, 1, T_audio), jnp.float32)   # NCW
    semantic_repr = jax.random.normal(k_sem, (B, CFG["semantic_channels"], T_sem),
                                      jnp.float32)                                # NCW

    # Packed params carry static metadata (ints/strings), so close over them
    # instead of passing them through jit's argument pytree.
    fwd = jax.jit(lambda a, s: dualcodec_forward(params, a, s))
    acoustic, semantic = fwd(audio_data, semantic_repr)
    jax.block_until_ready((acoustic["audio"], acoustic["codes"], acoustic["latents"],
                           semantic["x"], semantic["codes"], semantic["latents"]))

    assert acoustic["audio"].shape == (B, 1, T_audio)
    assert acoustic["codes"].shape == (B, CFG["n_codebooks"], T_sem)
    assert acoustic["latents"].shape == (B, CFG["n_codebooks"] * CFG["codebook_dim"], T_sem)
    assert semantic["x"].shape == (B, CFG["semantic_channels"], T_sem)
    assert semantic["codes"].shape == (B, 1, T_sem)
    assert bool(jnp.isfinite(acoustic["audio"]).all())
    assert bool(jnp.isfinite(semantic["x"]).all())
    print("KERNEL_OK")
</pallas_src>

<mosaic_0001>
module attributes {stable_mosaic.version = 11 : i64} {
  func.func @kernel(%arg0: i32, %arg1: memref<1x48x16xf32, #tpu.memory_space<vmem>>, %arg2: memref<112x24xbf16, #tpu.memory_space<vmem>>, %arg3: memref<1x24xf32, #tpu.memory_space<vmem>>, %arg4: memref<1x48x24xf32, #tpu.memory_space<vmem>>, %arg5: memref<66x16xf32, #tpu.memory_space<vmem>>, %arg6: memref<48x112xbf16, #tpu.memory_space<vmem>>) attributes {dimension_semantics = [#tpu.dimension_semantics<parallel>], iteration_bounds = array<i64: 2>, scalar_prefetch = 0 : i64, scratch_operands = 2 : i64, tpu.core_type = #tpu.core_type<tc>, window_params = [{transform_indices = @transform_0, window_bounds = array<i64: 1, 48, 16>}, {pipeline_mode = #tpu.pipeline_mode<synchronous>, transform_indices = @transform_1, window_bounds = array<i64: 112, 24>}, {pipeline_mode = #tpu.pipeline_mode<synchronous>, transform_indices = @transform_2, window_bounds = array<i64: 1, 24>}, {transform_indices = @transform_3, window_bounds = array<i64: 1, 48, 24>}]} {
    %c0 = arith.constant 0 : index
    %c0_0 = arith.constant 0 : index
    %c0_1 = arith.constant 0 : index
    %0 = vector.load %arg1[%c0, %c0_0, %c0_1] : memref<1x48x16xf32, #tpu.memory_space<vmem>>, vector<1x48x16xf32>
    %1 = vector.shape_cast %0 : vector<1x48x16xf32> to vector<48x16xf32>
    %cst = arith.constant 0.000000e+00 : f32
    %2 = vector.broadcast %cst : f32 to vector<9x16xf32>
    %c0_2 = arith.constant 0 : index
    %c0_3 = arith.constant 0 : index
    %3 = vector.load %arg5[%c0_2, %c0_3] : memref<66x16xf32, #tpu.memory_space<vmem>>, vector<9x16xf32>
    tpu.vector_store %arg5[%c0_2, %c0_3], %2 {strides = array<i32>} : memref<66x16xf32, #tpu.memory_space<vmem>>, vector<9x16xf32>,
    %cst_4 = arith.constant 0.000000e+00 : f32
    %4 = vector.broadcast %cst_4 : f32 to vector<9x16xf32>
    %c57 = arith.constant 57 : index
    %c0_5 = arith.constant 0 : index
    %5 = vector.load %arg5[%c57, %c0_5] : memref<66x16xf32, #tpu.memory_space<vmem>>, vector<9x16xf32>
    tpu.vector_store %arg5[%c57, %c0_5], %4 {strides = array<i32>} : memref<66x16xf32, #tpu.memory_space<vmem>>, vector<9x16xf32>,
    %c9 = arith.constant 9 : index
    %c0_6 = arith.constant 0 : index
    %6 = vector.load %arg5[%c9, %c0_6] : memref<66x16xf32, #tpu.memory_space<vmem>>, vector<48x16xf32>
    tpu.vector_store %arg5[%c9, %c0_6], %1 {strides = array<i32>} : memref<66x16xf32, #tpu.memory_space<vmem>>, vector<48x16xf32>,
    %c0_7 = arith.constant 0 : index
    %c0_8 = arith.constant 0 : index
    %7 = vector.load %arg5[%c0_7, %c0_8] : memref<66x16xf32, #tpu.memory_space<vmem>>, vector<66x16xf32>
    %8 = vector.extract_strided_slice %7 {offsets = [0, 0], sizes = [48, 16], strides = [1, 1]} : vector<66x16xf32> to vector<48x16xf32>
    %9 = arith.truncf %8 : vector<48x16xf32> to vector<48x16xbf16>
    %c0_9 = arith.constant 0 : index
    %c0_10 = arith.constant 0 : index
    %10 = vector.load %arg6[%c0_9, %c0_10] : memref<48x112xbf16, #tpu.memory_space<vmem>>, vector<48x16xbf16>
    tpu.vector_store %arg6[%c0_9, %c0_10], %9 {strides = array<i32>} : memref<48x112xbf16, #tpu.memory_space<vmem>>, vector<48x16xbf16>,
    %11 = vector.extract_strided_slice %7 {offsets = [3, 0], sizes = [48, 16], strides = [1, 1]} : vector<66x16xf32> to vector<48x16xf32>
    %12 = arith.truncf %11 : vector<48x16xf32> to vector<48x16xbf16>
    %c0_11 = arith.constant 0 : index
    %c16 = arith.constant 16 : index
    %13 = vector.load %arg6[%c0_11, %c16] : memref<48x112xbf16, #tpu.memory_space<vmem>>, vector<48x16xbf16>
    tpu.vector_store %arg6[%c0_11, %c16], %12 {strides = array<i32>} : memref<48x112xbf16, #tpu.memory_space<vmem>>, vector<48x16xbf16>,
    %14 = vector.extract_strided_slice %7 {offsets = [6, 0], sizes = [48, 16], strides = [1, 1]} : vector<66x16xf32> to vector<48x16xf32>
    %15 = arith.truncf %14 : vector<48x16xf32> to vector<48x16xbf16>
    %c0_12 = arith.constant 0 : index
    %c32 = arith.constant 32 : index
    %16 = vector.load %arg6[%c0_12, %c32] : memref<48x112xbf16, #tpu.memory_space<vmem>>, vector<48x16xbf16>
    tpu.vector_store %arg6[%c0_12, %c32], %15 {strides = array<i32>} : memref<48x112xbf16, #tpu.memory_space<vmem>>, vector<48x16xbf16>,
    %17 = vector.extract_strided_slice %7 {offsets = [9, 0], sizes = [48, 16], strides = [1, 1]} : vector<66x16xf32> to vector<48x16xf32>
    %18 = arith.truncf %17 : vector<48x16xf32> to vector<48x16xbf16>
    %c0_13 = arith.constant 0 : index
    %c48 = arith.constant 48 : index
    %19 = vector.load %arg6[%c0_13, %c48] : memref<48x112xbf16, #tpu.memory_space<vmem>>, vector<48x16xbf16>
    tpu.vector_store %arg6[%c0_13, %c48], %18 {strides = array<i32>} : memref<48x112xbf16, #tpu.memory_space<vmem>>, vector<48x16xbf16>,
    %20 = vector.extract_strided_slice %7 {offsets = [12, 0], sizes = [48, 16], strides = [1, 1]} : vector<66x16xf32> to vector<48x16xf32>
    %21 = arith.truncf %20 : vector<48x16xf32> to vector<48x16xbf16>
    %c0_14 = arith.constant 0 : index
    %c64 = arith.constant 64 : index
    %22 = vector.load %arg6[%c0_14, %c64] : memref<48x112xbf16, #tpu.memory_space<vmem>>, vector<48x16xbf16>
    tpu.vector_store %arg6[%c0_14, %c64], %21 {strides = array<i32>} : memref<48x112xbf16, #tpu.memory_space<vmem>>, vector<48x16xbf16>,
    %23 = vector.extract_strided_slice %7 {offsets = [15, 0], sizes = [48, 16], strides = [1, 1]} : vector<66x16xf32> to vector<48x16xf32>
    %24 = arith.truncf %23 : vector<48x16xf32> to vector<48x16xbf16>
    %c0_15 = arith.constant 0 : index
    %c80 = arith.constant 80 : index
    %25 = vector.load %arg6[%c0_15, %c80] : memref<48x112xbf16, #tpu.memory_space<vmem>>, vector<48x16xbf16>
    tpu.vector_store %arg6[%c0_15, %c80], %24 {strides = array<i32>} : memref<48x112xbf16, #tpu.memory_space<vmem>>, vector<48x16xbf16>,
    %26 = vector.extract_strided_slice %7 {offsets = [18, 0], sizes = [48, 16], strides = [1, 1]} : vector<66x16xf32> to vector<48x16xf32>
    %27 = arith.truncf %26 : vector<48x16xf32> to vector<48x16xbf16>
    %c0_16 = arith.constant 0 : index
    %c96 = arith.constant 96 : index
    %28 = vector.load %arg6[%c0_16, %c96] : memref<48x112xbf16, #tpu.memory_space<vmem>>, vector<48x16xbf16>
    tpu.vector_store %arg6[%c0_16, %c96], %27 {strides = array<i32>} : memref<48x112xbf16, #tpu.memory_space<vmem>>, vector<48x16xbf16>,
    %c0_17 = arith.constant 0 : index
    %c0_18 = arith.constant 0 : index
    %29 = vector.load %arg6[%c0_17, %c0_18] : memref<48x112xbf16, #tpu.memory_space<vmem>>, vector<48x112xbf16>
    %c0_19 = arith.constant 0 : index
    %c0_20 = arith.constant 0 : index
    %30 = vector.load %arg2[%c0_19, %c0_20] : memref<112x24xbf16, #tpu.memory_space<vmem>>, vector<112x24xbf16>
    %cst_21 = arith.constant dense<0.000000e+00> : vector<48x24xf32>
    %31 = tpu.matmul %29, %30, %cst_21 {dimension_numbers = #tpu.dot_dimension_numbers<[1], [0], [0], [1], [0, 0, 1, 1], [], []>} : vector<48x112xbf16>, vector<112x24xbf16>, vector<48x24xf32> -> vector<48x24xf32>
    %c0_22 = arith.constant 0 : index
    %c0_23 = arith.constant 0 : index
    %32 = vector.load %arg3[%c0_22, %c0_23] : memref<1x24xf32, #tpu.memory_space<vmem>>, vector<1x24xf32>
    %33 = vector.broadcast %32 : vector<1x24xf32> to vector<48x24xf32>
    %34 = arith.addf %31, %33 : vector<48x24xf32>
    %c0_24 = arith.constant 0 : index
    %c0_25 = arith.constant 0 : index
    %c0_26 = arith.constant 0 : index
    %35 = vector.load %arg4[%c0_24, %c0_25, %c0_26] : memref<1x48x24xf32, #tpu.memory_space<vmem>>, vector<1x48x24xf32>
    %36 = vector.shape_cast %35 : vector<1x48x24xf32> to vector<48x24xf32>
    %37 = vector.shape_cast %34 : vector<48x24xf32> to vector<1x48x24xf32>
    tpu.vector_store %arg4[%c0_24, %c0_25, %c0_26], %37 {strides = array<i32>} : memref<1x48x24xf32, #tpu.memory_space<vmem>>, vector<1x48x24xf32>,
    return
  }
  func.func @transform_0(%arg0: i32) -> (i32, i32, i32) {
    %c0_i32 = arith.constant 0 : i32
    %c0_i32_0 = arith.constant 0 : i32
    %c0_i32_1 = arith.constant 0 : i32
    return %arg0, %c0_i32, %c0_i32_0 : i32, i32, i32
  }
  func.func @transform_1(%arg0: i32) -> (i32, i32) {
    %c0_i32 = arith.constant 0 : i32
    %c0_i32_0 = arith.constant 0 : i32
    %c0_i32_1 = arith.constant 0 : i32
    return %c0_i32, %c0_i32_0 : i32, i32
  }
  func.func @transform_2(%arg0: i32) -> (i32, i32) {
    %c0_i32 = arith.constant 0 : i32
    %c0_i32_0 = arith.constant 0 : i32
    %c0_i32_1 = arith.constant 0 : i32
    return %c0_i32, %c0_i32_0 : i32, i32
  }
  func.func @transform_3(%arg0: i32) -> (i32, i32, i32) {
    %c0_i32 = arith.constant 0 : i32
    %c0_i32_0 = arith.constant 0 : i32
    %c0_i32_1 = arith.constant 0 : i32
    return %arg0, %c0_i32, %c0_i32_0 : i32, i32, i32
  }
}

</mosaic_0001>

<bundles_post_ra>
// kernel: tpu_custom_call.1
= control target key start
LH: loop header
LB: loop body
LE: loop exit
PB: predicated region body
PF: predicated region fallthrough
CT: control target
= control target key end

     0   :  { %s1037_s12 = smov 0   ;;  %s1482_s0 = inlined_call_operand.vmem [shape: f32[2,48,16], index: 0, kind: input, shape index: {}]   ;;  %s1483_s1 = inlined_call_operand.vmem [shape: bf16[112,24], index: 1, kind: input, shape index: {}]   ;;  %s1484_s2 = inlined_call_operand.vmem [shape: f32[1,24], index: 2, kind: input, shape index: {}]   ;;  %s1485_s3 = inlined_call_operand.vmem [shape: f32[2,48,24], index: 3, kind: output, shape index: {}]  }
   0x1 LB: > { %s863_s13 = sadd.s32 4294967295, %s1007_s12   ;;  %p867_p0 = scmp.ge.s32.totalorder %s1007_s12, 1  ;;  %s1007_s12 = sphi %s1037_s12, %s13_s12  }
   0x2   : > { %p137_p1 = scmp.lt.s32.totalorder %s1007_s12, 3 }
   0x4   : > { %p138_p2 = pnand %p867_p0, %p137_p1 }
   0x5   : > { %p161_p3 = scmp.lt.s32.totalorder (!%p138_p2), %s863_s13, 1  ;;  %s1010_s22 = smov (!%p138_p2), 64  }
   0x6   : > { %141 = sbr.rel (%p138_p2) target bundleno = 423 (0x1a7), region = 32  ;;  %s1011_s23 = smov (!%p138_p2), 32  }
   0x7   : > { %s1012_s26 = smov (!%p138_p2), 96   ;;  %s1013_s29 = smov (!%p138_p2), 80  }
   0x8   : > { %s1014_s5 = smov (!%p138_p2), 16   ;;  %s1015_s10 = smov (!%p138_p2), 48  }
   0xb   : > { %vm178_vm0 = vcmask 130048   ;;  %s1499_s13 = smov (!%p161_p3, %s863_s13), 1  ;;  %v1009_v0 = vmov 0.0   ;;  %vm180_vm1 = vcmask 122880   ;;  %vm491_vm2 = vcmask 1041408   ;;  %v991_v28 = vld [vmem:[%s1483_s1 + $0x30] sm:$0xff]  }
   0xc   : > { %179 = vst.msk [vmem:[#allocation2] sm:$0xff] %vm178_vm0, %v1009_v0  ;;  %182 = vst.msk [vmem:[#allocation2 + $0x39] sm:$0xff] %vm178_vm0, %v1009_v0  ;;  %960 = vmatprep.subr.bf16.mxu1 %v1009_v0  ;;  %934 = vmatprep.subr.bf16.mxu0 %v1009_v0  ;;  %s974_s14 = smul.u32 48, %s1499_s13  ;;  %vm492_vm3 = vcmask 1045508   ;;  %vm330_vm4 = vcmask 1040384   ;;  %vm331_vm5 = vcmask 1044484  }
   0xd   : > { %181 = vst.msk [vmem:[#allocation2 + $0x8] sm:$0x1] %vm180_vm1, %v1009_v0  ;;  %183 = vst.msk [vmem:[#allocation2 + $0x41] sm:$0x1] %vm180_vm1, %v1009_v0  ;;  %vm603_vm6 = vcmask 1042432   ;;  %vm604_vm7 = vcmask 1046532   ;;  %967 = vmatpush3.bf16.msra.mxu1 %v991_v28  ;;  %935 = vmatpush3.bf16.msra.mxu0 %v991_v28 }
   0xe   : > { %s165_s17 = scalar_lea.vmem %s1482_s0, %s974_s14  ;;  %vm538_vm8 = vsmask.f32 256  ;;  %vm539_vm9 = vsmask.f32 4368  ;;  %vm1086_vm10 = vmor %vm491_vm2, %vm492_vm3  ;;  %961 = vmatprep.subr.bf16.mxu1 %v1009_v0  ;;  %936 = vmatprep.subr.bf16.mxu0 %v1009_v0  ;;  %vm234_vm13 = vsmask.f32 2304  ;;  %s170_s18 = scalar_lea.vmem %s1485_s3, %s974_s14 }
   0xf   : > { %v173_v1 = vld [vmem:[%s165_s17 + $0x8] sm:$0xff]  ;;  %v174_v2 = vld [vmem:[%s165_s17 + $0x10] sm:$0xff]  ;;  %v175_v3 = vld [vmem:[%s165_s17 + $0x18] sm:$0xff]  ;;  %vm235_vm14 = vsmask.f32 6416 }
  0x10   : > { %185 = vst.msk [vmem:[#allocation2 + $0x11] sm:$0xff] %vm178_vm0, %v173_v1  ;;  %186 = vst.msk [vmem:[#allocation2 + $0x19] sm:$0xff] %vm178_vm0, %v174_v2  ;;  %v172_v4 = vld [vmem:[%s165_s17] sm:$0xff]  ;;  %v177_v6 = vld [vmem:[%s165_s17 + $0x28] sm:$0xff]  ;;  %vm399_vm1 = vsmask.f32 3328 }
  0x11   : > { %187 = vst.msk [vmem:[#allocation2 + $0x21] sm:$0xff] %vm178_vm0, %v175_v3  ;;  %v176_v5 = vld [vmem:[%s165_s17 + $0x20] sm:$0xff]  ;;  %184 = vst.msk [vmem:[#allocation2 + $0x9] sm:$0xff] %vm178_vm0, %v172_v4  ;;  %v992_v46 = vld [vmem:[%s1483_s1 + $0x28] sm:$0xff]   ;;  %vm400_vm2 = vsmask.f32 7440 }
  0x12   : > { %188 = vst.msk [vmem:[#allocation2 + $0x29] sm:$0xff] %vm178_vm0, %v176_v5  ;;  %189 = vst.msk [vmem:[#allocation2 + $0x31] sm:$0xff] %vm178_vm0, %v177_v6  ;;  %968 = vmatpush3.bf16.msra.mxu1 %v992_v46  ;;  %937 = vmatpush3.bf16.msra.mxu0 %v992_v46  ;;  %v993_v1 = vld [vmem:[%s1483_s1 + $0x20] sm:$0xff]   ;;  %v995_v46 = vld [vmem:[%s1483_s1 + $0x10] sm:$0xff]  }
  0x13   : > { %v190_v7 = vld [vmem:[#allocation2] sm:$0xff]  ;;  %vm1099_vm11 = vmor %vm330_vm4, %vm331_vm5  ;;  %962 = vmatprep.subr.bf16.mxu1 %v1009_v0  ;;  %938 = vmatprep.subr.bf16.mxu0 %v1009_v0  ;;  %vm223_vm4 = vcmask 125952   ;;  %vm1016_vm5 = vmmov 0  }
  0x14   : > { %v1067_v8 = vpack.c.bf16 %v190_v7, %v190_v7  ;;  %vm1113_vm12 = vmor %vm603_vm6, %vm604_vm7  ;;  %952 = vmatprep.mubr.msk.bf16.mxu1 %vm1016_vm5, %v1009_v0  ;;  %948 = vmatprep.mubr.msk.bf16.mxu0 %vm1016_vm5, %v1009_v0  ;;  %vm323_vm6 = vcmask 257152   ;;  %vm370_vm7 = vcmask 388352  }
  0x15   : > { %vm1145_vm15 = vmor %vm538_vm8, %vm539_vm9  ;;  %vm484_vm8 = vcmask 519552   ;;  %vm531_vm9 = vcmask 650752  }
  0x16   : > { %v238_v9 = vshrl.u32 %v1067_v8, 16  ;;  %v241_v10 = vshll.u32 %v1067_v8, 16  ;;  %969 = vmatpush3.bf16.msra.mxu1 %v993_v1  ;;  %vm1201_vm0 = vmor %vm234_vm13, %vm235_vm14  ;;  %939 = vmatpush3.bf16.msra.mxu0 %v993_v1  ;;  %224 = vst.msk [vmem:[#allocation3] sm:$0xf] %vm223_vm4, %v1067_v8  ;;  %vm801_vm13 = vcmask 195584  }
  0x17   : > { %v193_v13 = vld [vmem:[#allocation2 + $0x18] sm:$0xff]  ;;  %963 = vmatprep.subr.bf16.mxu1 %v1009_v0  ;;  %940 = vmatprep.subr.bf16.mxu0 %v1009_v0  ;;  %vm1259_vm3 = vmor %vm399_vm1, %vm400_vm2 }
  0x18   : > { %v1071_v11 = vrot.slane %v238_v9, 5  ;;  %v1073_v12 = vrot.slane %v241_v10, 6  ;;  %v194_v14 = vld [vmem:[#allocation2 + $0x20] sm:$0xff]  ;;  %v1075_v15 = vpack.c.bf16 %v193_v13, %v193_v13  ;;  %v192_v17 = vld [vmem:[#allocation2 + $0x10] sm:$0xff]  ;;  %v191_v43 = vld [vmem:[#allocation2 + $0x8] sm:$0xff] }
  0x19   : > { %v1077_v16 = vpack.c.bf16 %v194_v14, %v194_v14  ;;  %v195_v18 = vld [vmem:[#allocation2 + $0x28] sm:$0xff]  ;;  %v1079_v19 = vpack.c.bf16 %v192_v17, %v192_v17  ;;  %v196_v27 = vld [vmem:[#allocation2 + $0x30] sm:$0xff]  ;;  %v1158_v55 = vpack.c.bf16 %v191_v43, %v191_v43 }
  0x1a   : > { %v1081_v20 = vpack.c.bf16 %v195_v18, %v195_v18  ;;  %v244_v21 = vor.u32 %v1073_v12, %v1071_v11  ;;  %v499_v23 = vrot.slane %v1075_v15, 6  ;;  %v341_v25 = vrot.slane %v1075_v15, 7  ;;  %227 = vst.msk [vmem:[#allocation3 + $0xc] sm:$0xf] %vm223_vm4, %v1075_v15 }
  0x1b   : > { %v502_v24 = vrot.slane %v1077_v16, 6  ;;  %v611_v26 = vrot.slane %v1077_v16, 5  ;;  %v338_v30 = vrot.slane %v1079_v19, 7  ;;  %v344_v32 = vrot.slane %v1077_v16, 7  ;;  %225 = vst.msk [vmem:[#allocation3 + $0x4] sm:$0xf] %vm223_vm4, %v1158_v55 }
  0x1c   : > { %v614_v31 = vrot.slane %v1081_v20, 5  ;;  %v1107_v33 = vshrl.u32 %v1075_v15, 16  ;;  %v501_v34 = vrot.slane %v499_v23, 4  ;;  %v343_v37 = vrot.slane %v341_v25, 4  ;;  %226 = vst.msk [vmem:[#allocation3 + $0x8] sm:$0xf] %vm223_vm4, %v1079_v19 }
  0x1d   : > { %v613_v36 = vrot.slane %v611_v26, 4  ;;  %v1120_v38 = vshrl.u32 %v1077_v16, 16  ;;  %v340_v39 = vrot.slane %v338_v30, 4  ;;  %v1125_v40 = vshll.u32 %v1077_v16, 16  ;;  %228 = vst.msk [vmem:[#allocation3 + $0x10] sm:$0xf] %vm223_vm4, %v1077_v16 }
  0x1e   : > { %v547_v41 = vrot.slane %v1107_v33, 7  ;;  %v1128_v42 = vpack.c.bf16 %v196_v27, %v196_v27  ;;  %v503_v44 = vsel %vm1086_vm10, %v501_v34, %v502_v24  ;;  %v504_v51 = vrot.slane %v502_v24, 4  ;;  %229 = vst.msk [vmem:[#allocation3 + $0x14] sm:$0xf] %vm223_vm4, %v1081_v20 }
  0x1f   : > { %v551_v45 = vrot.slane %v1120_v38, 7  ;;  %517 = vrot.lane.b32.xlu0 %v503_v44, %s1010_s22  ;;  %v342_v47 = vsel %vm1099_vm11, %v340_v39, %v341_v25  ;;  %v615_v48 = vsel %vm1113_vm12, %v613_v36, %v614_v31  ;;  %v345_v52 = vsel %vm1099_vm11, %v343_v37, %v344_v32  ;;  %v994_v25 = vld [vmem:[%s1483_s1 + $0x18] sm:$0xff]  }
  0x20   : > { %v550_v50 = vrot.slane %v547_v41, 4  ;;  %356 = vrot.lane.b32.xlu1 %v342_v47, %s1011_s23  ;;  %v505_v54 = vrot.slane %v1081_v20, 6  ;;  %v616_v56 = vrot.slane %v614_v31, 4  ;;  %v617_v57 = vrot.slane %v1128_v42, 5  ;;  %970 = vmatpush3.bf16.msra.mxu1 %v994_v25 }
  0x21   : > { %v552_v53 = vor.u32 %v551_v45, %v1125_v40  ;;  %v245_v58 = vrot.slane %v244_v21, 4  ;;  %v1162_v59 = vshrl.u32 %v1081_v20, 16  ;;  %v1168_v61 = vshrl.u32 %v1158_v55, 16  ;;  %964 = vmatprep.subr.bf16.mxu1 %v1009_v0  ;;  %941 = vmatpush3.bf16.msra.mxu0 %v994_v25 }
  0x22   : > { %v250_v62 = vshll.u32 %v1158_v55, 16  ;;  %v1172_v63 = vshll.u32 %v1081_v20, 16  ;;  %v1181_v3 = vshrl.u32 %v1079_v19, 16  ;;  %v1184_v4 = vshll.u32 %v1079_v19, 16  ;;  %942 = vmatprep.subr.bf16.mxu0 %v1009_v0 }
  0x23   : > { %v553_v60 = vsel %vm1145_vm15, %v550_v50, %v552_v53  ;;  %629 = vrot.lane.b32.xlu0 %v615_v48, %s1012_s26  ;;  %v555_v2 = vrot.slane %v1162_v59, 7  ;;  %v269_v5 = vrot.slane %v1107_v33, 5  ;;  %v249_v6 = vrot.slane %v1168_v61, 5 }
  0x24   : > { %358 = vrot.lane.b32.xlu1 %v345_v52, %s1011_s23  ;;  %v252_v7 = vrot.slane %v250_v62, 6  ;;  %v1192_v9 = vshll.u32 %v1075_v15, 16  ;;  %v434_v10 = vrot.slane %v1125_v40, 5  ;;  %v506_v11 = vsel %vm1086_vm10, %v504_v51, %v505_v54  ;;  %971 = vmatpush3.bf16.msra.mxu1 %v995_v46 }
  0x25   : > { %v259_v13 = vrot.slane %v1181_v3, 5  ;;  %v262_v14 = vrot.slane %v1184_v4, 6  ;;  %v438_v17 = vrot.slane %v1120_v38, 4  ;;  %v554_v21 = vrot.slane %v551_v45, 4  ;;  %965 = vmatprep.subr.bf16.mxu1 %v1009_v0  ;;  %943 = vmatpush3.bf16.msra.mxu0 %v995_v46 }
  0x26   : > { %v1209_v18 = vor.u32 %v252_v7, %v249_v6  ;;  %v272_v24 = vrot.slane %v1192_v9, 6  ;;  %v556_v27 = vor.u32 %v555_v2, %v1172_v63  ;;  %v279_v34 = vrot.slane %v1120_v38, 5  ;;  %v996_v7 = vld [vmem:[%s1483_s1 + $0x8] sm:$0xff]   ;;  %944 = vmatprep.subr.bf16.mxu0 %v1009_v0 }
  0x27   : > { %572 = vrot.lane.b32.xlu0 %v553_v60, %s1013_s29  ;;  %v263_v28 = vor.u32 %v262_v14, %v259_v13  ;;  %v439_v31 = vor.u32 %v438_v17, %v434_v10  ;;  %v282_v39 = vrot.slane %v1125_v40, 6  ;;  %v424_v43 = vrot.slane %v1192_v9, 5 }
  0x28   : > { %519 = vrot.lane.b32.xlu1 %v506_v11, %s1010_s22  ;;  %v254_v36 = vsel %vm1201_vm0, %v245_v58, %v1209_v18  ;;  %v273_v37 = vor.u32 %v272_v24, %v269_v5  ;;  %v618_v44 = vsel %vm1113_vm12, %v616_v56, %v617_v57  ;;  %v428_v38 = vrot.slane %v1107_v33, 4  ;;  %972 = vmatpush3.bf16.msra.mxu1 %v996_v7  ;;  %v198_v33 = vld [vmem:[#allocation2 + $0x40] sm:$0x3] }
  0x29   : > { %v265_v45 = vrot.slane %v263_v28, 4  ;;  %v557_v47 = vsel %vm1145_vm15, %v554_v21, %v556_v27  ;;  %v440_v48 = vrot.slane %v439_v31, 4  ;;  %v444_v50 = vrot.slane %v1172_v63, 5  ;;  %966 = vmatprep.subr.bf16.mxu1 %v1009_v0  ;;  %945 = vmatpush3.bf16.msra.mxu0 %v996_v7  ;;  %v997_v27 = vld [vmem:[%s1483_s1] sm:$0xff]  }
  0x2a   : > { %v275_v52 = vrot.slane %v273_v37, 4  ;;  %v283_v53 = vor.u32 %v282_v39, %v279_v34  ;;  %v429_v56 = vor.u32 %v428_v38, %v424_v43  ;;  %v289_v58 = vrot.slane %v1162_v59, 5  ;;  %946 = vmatprep.subr.bf16.mxu0 %v1009_v0 }
  0x2b   : > { %305 = vrot.lane.b32.xlu0 %v254_v36, %s1014_s5  ;;  %v274_v51 = vsel %vm1201_vm0, %v265_v45, %v273_v37  ;;  %v292_v60 = vrot.slane %v1172_v63, 6  ;;  %v1251_v1 = vshrl.u32 %v1128_v42, 16  ;;  %v1254_v5 = vshll.u32 %v1128_v42, 16 }
  0x2c   : > { %631 = vrot.lane.b32.xlu1 %v618_v44, %s1012_s26  ;;  %v284_v11 = vsel %vm1201_vm0, %v275_v52, %v283_v53  ;;  %v255_v13 = vrot.slane %v1209_v18, 4  ;;  %v430_v14 = vrot.slane %v429_v56, 4  ;;  %v445_v17 = vsel %vm1259_vm3, %v440_v48, %v444_v50  ;;  %973 = vmatpush3.bf16.msra.mxu1 %v997_v27 }
  0x2d   : > { %v293_v21 = vor.u32 %v292_v60, %v289_v58  ;;  %v299_v24 = vrot.slane %v1251_v1, 5  ;;  %v302_v25 = vrot.slane %v1254_v5, 6  ;;  %v285_v18 = vrot.slane %v283_v53, 4  ;;  %947 = vmatpush3.bf16.msra.mxu0 %v997_v27  ;;  %v197_v53 = vld [vmem:[#allocation2 + $0x38] sm:$0xff] }
  0x2e   : > { %v335_v31 = vrot.slane %v1158_v55, 7  ;;  %v435_v34 = vsel %vm1259_vm3, %v430_v14, %v434_v10  ;;  %v264_v36 = vsel %vm1201_vm0, %v255_v13, %v263_v28  ;;  %v877_v44 = vrot.slane %v1067_v8, 11 }
  0x2f   : > { %309 = vrot.lane.b32.xlu0 %v274_v51, %s1014_s5  ;;  %v295_v37 = vrot.slane %v293_v21, 4  ;;  %v303_v39 = vor.u32 %v302_v25, %v299_v24  ;;  %v294_v45 = vsel %vm1201_vm0, %v285_v18, %v293_v21  ;;  %v347_v40 = vrot.slane %v1081_v20, 7 }
  0x30   : > { %574 = vrot.lane.b32.xlu1 %v557_v47, %s1013_s29  ;;  %v337_v38 = vrot.slane %v335_v31, 4  ;;  %v414_v10 = vrot.slane %v1184_v4, 5  ;;  %v418_v46 = vrot.slane %v1181_v3, 4  ;;  %v405_v28 = vrot.slane %v1168_v61, 4 }
  0x31   : > { %v408_v47 = vrot.slane %v250_v62, 5  ;;  %v304_v48 = vsel %vm1201_vm0, %v295_v37, %v303_v39  ;;  %v336_v51 = vsel %vm1099_vm11, %v877_v44, %v335_v31  ;;  %v350_v52 = vrot.slane %v1128_v42, 7 }
  0x32   : > { %v339_v56 = vsel %vm1099_vm11, %v337_v38, %v338_v30  ;;  %v349_v58 = vrot.slane %v347_v40, 4  ;;  %v346_v62 = vrot.slane %v344_v32, 4  ;;  %v608_v12 = vrot.slane %v1075_v15, 5 }
  0x33   : > { %311 = vrot.lane.b32.xlu0 %v284_v11, %s1014_s5  ;;  %v419_v60 = vor.u32 %v418_v46, %v414_v10  ;;  %v409_v7 = vor.u32 %v408_v47, %v405_v28  ;;  %v448_v11 = vrot.slane %v1162_v59, 4  ;;  %v890_v13 = vrot.slane %v1079_v19, 9 }
  0x34   : > { %472 = vrot.lane.b32.xlu1 %v445_v17, %s1015_s10  ;;  %v1319_v14 = vpack.c.bf16 %v197_v53, %v197_v53  ;;  %v454_v17 = vrot.slane %v1254_v5, 5  ;;  %v458_v30 = vrot.slane %v1251_v1, 4  ;;  %v610_v21 = vrot.slane %v608_v12, 4 }
  0x35   : > { %v1325_v32 = vsel %vm1113_vm12, %v890_v13, %v608_v12  ;;  %v348_v25 = vsel %vm1099_vm11, %v346_v62, %v347_v40  ;;  %v410_v27 = vrot.slane %v409_v7, 4  ;;  %v351_v8 = vsel %vm1099_vm11, %v349_v58, %v350_v52 }
  0x36   : > { %v1332_v24 = vsel %vm1113_vm12, %v610_v21, %v611_v26  ;;  %v449_v26 = vor.u32 %v448_v11, %v444_v50  ;;  %v420_v18 = vrot.slane %v419_v60, 4  ;;  %v459_v31 = vor.u32 %v458_v30, %v454_v17 }
  0x37   : > { %470 = vrot.lane.b32.xlu0 %v435_v34, %s1015_s10  ;;  %v462_v34 = vshll.u32 %v1319_v14, 16  ;;  %v415_v16 = vsel %vm1259_vm3, %v410_v27, %v414_v10  ;;  %v496_v37 = vrot.slane %v1079_v19, 6  ;;  %v885_v44 = vrot.slane %v1158_v55, 10 }
  0x38   : > { %307 = vrot.lane.b32.xlu1 %v264_v36, %s1014_s5  ;;  %v450_v63 = vrot.slane %v449_v26, 4  ;;  %v425_v29 = vsel %vm1259_vm3, %v420_v18, %v424_v43  ;;  %v460_v50 = vrot.slane %v459_v31, 4  ;;  %v508_v40 = vrot.slane %v1128_v42, 6 }
  0x39   : > { %v464_v36 = vrot.slane %v462_v34, 5  ;;  %v498_v38 = vrot.slane %v496_v37, 4  ;;  %v497_v19 = vsel %vm1086_vm10, %v885_v44, %v496_v37  ;;  %v507_v43 = vrot.slane %v505_v54, 4 }
  0x3a   : > { %v455_v39 = vsel %vm1259_vm3, %v450_v63, %v454_v17  ;;  %v543_v10 = vrot.slane %v1181_v3, 7  ;;  %v510_v6 = vrot.slane %v508_v40, 4  ;;  %v511_v46 = vrot.slane %v1319_v14, 6 }
  0x3b   : > { %313 = vrot.lane.b32.xlu0 %v294_v45, %s1014_s5  ;;  %v465_v45 = vsel %vm1259_vm3, %v460_v50, %v464_v36  ;;  %v500_v55 = vsel %vm1086_vm10, %v498_v38, %v499_v23  ;;  %v563_v28 = vshrl.u32 %v1319_v14, 16  ;;  %v509_v20 = vsel %vm1086_vm10, %v507_v43, %v508_v40 }
  0x3c   : > { %315 = vrot.lane.b32.xlu1 %v304_v48, %s1014_s5  ;;  %v886_v54 = vrot.slane %v1168_v61, 11  ;;  %v544_v3 = vor.u32 %v543_v10, %v1184_v4  ;;  %v559_v15 = vrot.slane %v1251_v1, 7  ;;  %v512_v23 = vsel %vm1086_vm10, %v510_v6, %v511_v46 }
  0x3d   : > { %v546_v47 = vrot.slane %v543_v10, 4  ;;  %v548_v48 = vor.u32 %v547_v41, %v1192_v9  ;;  %v558_v4 = vrot.slane %v555_v2, 4  ;;  %v923_v59 = vpack.c.bf16 %v198_v33, %v198_v33 }
  0x3e   : > { %v545_v61 = vsel %vm1145_vm15, %v886_v54, %v544_v3  ;;  %v560_v1 = vor.u32 %v559_v15, %v1254_v5  ;;  %v562_v52 = vrot.slane %v559_v15, 4  ;;  %v620_v2 = vrot.slane %v1319_v14, 5 }
  0x3f   : > { %352 = vrot.lane.b32.xlu0 %v336_v51, %s1011_s23  ;;  %v565_v51 = vrot.slane %v563_v28, 7  ;;  %v549_v22 = vsel %vm1145_vm15, %v546_v47, %v548_v48  ;;  %v619_v5 = vrot.slane %v617_v57, 4  ;;  %v623_v58 = vrot.slane %v923_v59, 5  ;;  %v891_v28 = vld [vmem:[%s1484_s2] ss:$0 sm:$0xff] }
  0x40   : > { %354 = vrot.lane.b32.xlu1 %v339_v56, %s1011_s23  ;;  %v561_v41 = vsel %vm1145_vm15, %v558_v4, %v560_v1  ;;  %v622_v56 = vrot.slane %v620_v2, 4  ;;  %vm586_vm10 = vcmask 781952   ;;  %vm643_vm11 = vcmask 913152  }
  0x41   : > { %v566_v53 = vor.u32 %v565_v51, %v462_v34  ;;  %v621_v49 = vsel %vm1113_vm12, %v619_v5, %v620_v2 }
  0x42   : > { %v624_v62 = vsel %vm1113_vm12, %v622_v56, %v623_v58  ;;  %vm734_vm12 = vcmask 916480  }
  0x43   : > { %360 = vrot.lane.b32.xlu0 %v348_v25, %s1011_s23  ;;  %v567_v9 = vsel %vm1145_vm15, %v562_v52, %v566_v53 }
  0x44   : > { %362 = vrot.lane.b32.xlu1 %v351_v8, %s1011_s23 }
  0x47   : > { %466 = vrot.lane.b32.xlu0 %v415_v16, %s1015_s10 }
  0x48   : > { %468 = vrot.lane.b32.xlu1 %v425_v29, %s1015_s10 }
  0x4b   : > { %474 = vrot.lane.b32.xlu0 %v455_v39, %s1015_s10 }
  0x4c   : > { %476 = vrot.lane.b32.xlu1 %v465_v45, %s1015_s10 }
  0x4f   : > { %513 = vrot.lane.b32.xlu0 %v497_v19, %s1010_s22 }
  0x50   : > { %515 = vrot.lane.b32.xlu1 %v500_v55, %s1010_s22 }
  0x53   : > { %521 = vrot.lane.b32.xlu0 %v509_v20, %s1010_s22 }
  0x54   : > { %523 = vrot.lane.b32.xlu1 %v512_v23, %s1010_s22 }
  0x57   : > { %568 = vrot.lane.b32.xlu0 %v545_v61, %s1013_s29 }
  0x58   : > { %570 = vrot.lane.b32.xlu1 %v549_v22, %s1013_s29 }
  0x5b   : > { %576 = vrot.lane.b32.xlu0 %v561_v41, %s1013_s29 }
  0x5c   : > { %578 = vrot.lane.b32.xlu1 %v567_v9, %s1013_s29 }
  0x5f   : > { %625 = vrot.lane.b32.xlu0 %v1325_v32, %s1012_s26 }
  0x60   : > { %627 = vrot.lane.b32.xlu1 %v1332_v24, %s1012_s26 }
  0x63   : > { %633 = vrot.lane.b32.xlu0 %v621_v49, %s1012_s26 }
  0x64   : > { %635 = vrot.lane.b32.xlu1 %v624_v62, %s1012_s26 }
  0x91   : > { %v518_v42 = vpop.permute.xlu0 %517 }
  0x92   : > { %v357_v57 = vpop.permute.xlu1 %356 }
  0x95   : > { %v630_v12 = vpop.permute.xlu0 %629 }
  0x96   : > { %v359_v60 = vpop.permute.xlu1 %358 }
  0x99   : > { %v573_v7 = vpop.permute.xlu0 %572 }
  0x9a   : > { %v520_v11 = vpop.permute.xlu1 %519 }
  0x9d   : > { %v306_v13 = vpop.permute.xlu0 %305 }
  0x9e   : > { %v632_v14 = vpop.permute.xlu1 %631  ;;  %324 = vst.msk [vmem:[#allocation3] sm:$0xf] %vm323_vm6, %v306_v13 }
  0xa1   : > { %v310_v17 = vpop.permute.xlu0 %309 }
  0xa2   : > { %v575_v30 = vpop.permute.xlu1 %574  ;;  %326 = vst.msk [vmem:[#allocation3 + $0x8] sm:$0xf] %vm323_vm6, %v310_v17 }
  0xa3   : > { %373 = vst.msk [vmem:[#allocation3 + $0x8] sm:$0xf] %vm370_vm7, %v357_v57 }
  0xa5   : > { %v312_v35 = vpop.permute.xlu0 %311 }
  0xa6   : > { %v473_v21 = vpop.permute.xlu1 %472  ;;  %327 = vst.msk [vmem:[#allocation3 + $0xc] sm:$0xf] %vm323_vm6, %v312_v35 }
  0xa7   : > { %374 = vst.msk [vmem:[#allocation3 + $0xc] sm:$0xf] %vm370_vm7, %v359_v60 }
  0xa8   : > { %488 = vst.msk [vmem:[#allocation3 + $0xc] sm:$0xf] %vm484_vm8, %v473_v21 }
  0xa9   : > { %535 = vst.msk [vmem:[#allocation3 + $0xc] sm:$0xf] %vm531_vm9, %v520_v11  ;;  %v471_v32 = vpop.permute.xlu0 %470 }
  0xaa   : > { %590 = vst.msk [vmem:[#allocation3 + $0xc] sm:$0xf] %vm586_vm10, %v575_v30  ;;  %v308_v24 = vpop.permute.xlu1 %307 }
  0xab   : > { %487 = vst.msk [vmem:[#allocation3 + $0x8] sm:$0xf] %vm484_vm8, %v471_v32 }
  0xac   : > { %647 = vst.msk [vmem:[#allocation3 + $0xc] sm:$0xf] %vm643_vm11, %v632_v14 }
  0xad   : > { %325 = vst.msk [vmem:[#allocation3 + $0x4] sm:$0xf] %vm323_vm6, %v308_v24  ;;  %v314_v25 = vpop.permute.xlu0 %313 }
  0xae   : > { %534 = vst.msk [vmem:[#allocation3 + $0x8] sm:$0xf] %vm531_vm9, %v518_v42  ;;  %v316_v27 = vpop.permute.xlu1 %315 }
  0xaf   : > { %589 = vst.msk [vmem:[#allocation3 + $0x8] sm:$0xf] %vm586_vm10, %v573_v7 }
  0xb0   : > { %646 = vst.msk [vmem:[#allocation3 + $0x8] sm:$0xf] %vm643_vm11, %v630_v12 }
  0xb1   : > { %328 = vst.msk [vmem:[#allocation3 + $0x10] sm:$0xf] %vm323_vm6, %v314_v25  ;;  %329 = vst.msk [vmem:[#allocation3 + $0x14] sm:$0xf] %vm323_vm6, %v316_v27  ;;  %v353_v26 = vpop.permute.xlu0 %352 }
  0xb2   : > { %v355_v8 = vpop.permute.xlu1 %354  ;;  %371 = vst.msk [vmem:[#allocation3] sm:$0xf] %vm370_vm7, %v353_v26 }
  0xb3   : > { %372 = vst.msk [vmem:[#allocation3 + $0x4] sm:$0xf] %vm370_vm7, %v355_v8 }
  0xb5   : > { %v361_v31 = vpop.permute.xlu0 %360 }
  0xb6   : > { %v363_v34 = vpop.permute.xlu1 %362  ;;  %375 = vst.msk [vmem:[#allocation3 + $0x10] sm:$0xf] %vm370_vm7, %v361_v31 }
  0xb7   : > { %v998_v18 = vld [vmem:[#allocation3 + $0x8] sm:$0xff]   ;;  %376 = vst.msk [vmem:[#allocation3 + $0x14] sm:$0xf] %vm370_vm7, %v363_v34 }
  0xb8   : > { %953 = vmatmul.mubr.msk.bf16.vlgmr.msra.gmra.mxu1 %vm734_vm12, %v998_v18 }
  0xb9   : > { %956 = vmatprep.mubr.msk.bf16.mxu1 %vm1016_vm5, %v1009_v0  ;;  %v467_v16 = vpop.permute.xlu0 %466 }
  0xba   : > { %v469_v63 = vpop.permute.xlu1 %468  ;;  %485 = vst.msk [vmem:[#allocation3] sm:$0xf] %vm484_vm8, %v467_v16 }
  0xbb   : > { %486 = vst.msk [vmem:[#allocation3 + $0x4] sm:$0xf] %vm484_vm8, %v469_v63 }
  0xbd   : > { %v475_v29 = vpop.permute.xlu0 %474 }
  0xbe   : > { %v477_v50 = vpop.permute.xlu1 %476  ;;  %489 = vst.msk [vmem:[#allocation3 + $0x10] sm:$0xf] %vm484_vm8, %v475_v29 }
  0xbf   : > { %490 = vst.msk [vmem:[#allocation3 + $0x14] sm:$0xf] %vm484_vm8, %v477_v50 }
  0xc1   : > { %v514_v36 = vpop.permute.xlu0 %513 }
  0xc2   : > { %v516_v37 = vpop.permute.xlu1 %515  ;;  %532 = vst.msk [vmem:[#allocation3] sm:$0xf] %vm531_vm9, %v514_v36 }
  0xc3   : > { %533 = vst.msk [vmem:[#allocation3 + $0x4] sm:$0xf] %vm531_vm9, %v516_v37 }
  0xc5   : > { %v522_v39 = vpop.permute.xlu0 %521 }
  0xc6   : > { %v524_v0 = vpop.permute.xlu1 %523  ;;  %536 = vst.msk [vmem:[#allocation3 + $0x10] sm:$0xf] %vm531_vm9, %v522_v39 }
  0xc7   : > { %537 = vst.msk [vmem:[#allocation3 + $0x14] sm:$0xf] %vm531_vm9, %v524_v0 }
  0xc9   : > { %v569_v44 = vpop.permute.xlu0 %568 }
  0xca   : > { %v571_v45 = vpop.permute.xlu1 %570  ;;  %587 = vst.msk [vmem:[#allocation3] sm:$0xf] %vm586_vm10, %v569_v44 }
  0xcb   : > { %588 = vst.msk [vmem:[#allocation3 + $0x4] sm:$0xf] %vm586_vm10, %v571_v45 }
  0xcd   : > { %v577_v38 = vpop.permute.xlu0 %576 }
  0xce   : > { %v579_v40 = vpop.permute.xlu1 %578  ;;  %591 = vst.msk [vmem:[#allocation3 + $0x10] sm:$0xf] %vm586_vm10, %v577_v38 }
  0xcf   : > { %592 = vst.msk [vmem:[#allocation3 + $0x14] sm:$0xf] %vm586_vm10, %v579_v40 }
  0xd1   : > { %v626_v19 = vpop.permute.xlu0 %625 }
  0xd2   : > { %v628_v43 = vpop.permute.xlu1 %627  ;;  %644 = vst.msk [vmem:[#allocation3] sm:$0xf] %vm643_vm11, %v626_v19 }
  0xd3   : > { %645 = vst.msk [vmem:[#allocation3 + $0x4] sm:$0xf] %vm643_vm11, %v628_v43 }
  0xd5   : > { %v634_v10 = vpop.permute.xlu0 %633 }
  0xd6   : > { %v636_v55 = vpop.permute.xlu1 %635  ;;  %648 = vst.msk [vmem:[#allocation3 + $0x10] sm:$0xf] %vm643_vm11, %v634_v10 }
  0xd7   : > { %649 = vst.msk [vmem:[#allocation3 + $0x14] sm:$0xf] %vm643_vm11, %v636_v55 }
  0xda   : > { %v999_v6 = vld [vmem:[#allocation3] sm:$0xff]  }
  0xdb   : > { %949 = vmatmul.mubr.msk.bf16.vlgmr.msra.gmra.mxu0 %vm734_vm12, %v999_v6 }
  0xde   : > { %v1000_v46 = vld [vmem:[#allocation3 + $0x10] sm:$0xff]  }
  0xdf   : > { %957 = vmatmul.mubr.msk.bf16.gmra.mxu1 %vm734_vm12, %v1000_v46 }
 0x178   : > { %v786_v20 = vpop.f32.mrf.mxu1 }
 0x179   : > { %v787_v54 = vadd.f32 %v891_v28, %v786_v20 }
 0x17a   : > { %v954_v3 = vpop.f32.mrf.mxu1 }
 0x17b   : > { %804 = vst.msk [vmem:[%s170_s18 + $0x10] sm:$0xff] %vm801_vm13, %v787_v54 }
 0x17c   : > { %v789_v15 = vpop.f32.mrf.mxu1 }
 0x17d   : > { %v790_v23 = vadd.f32 %v891_v28, %v789_v15 }
 0x17e   : > { %v955_v47 = vpop.f32.mrf.mxu1 }
 0x17f   : > { %805 = vst.msk [vmem:[%s170_s18 + $0x18] sm:$0xff] %vm801_vm13, %v790_v23 }
 0x19b   : > { %v778_v48 = vpop.f32.mrf.mxu0 }
 0x19c   : > { %v779_v51 = vadd.f32 %v891_v28, %v778_v48 }
 0x19d   : > { %v950_v61 = vpop.f32.mrf.mxu0 }
 0x19e   : > { %802 = vst.msk [vmem:[%s170_s18] sm:$0xff] %vm801_vm13, %v779_v51 }
 0x19f   : > { %v781_v4 = vpop.f32.mrf.mxu0  ;;  %v794_v1 = vpop.f32.mrf.mxu1 }
 0x1a0   : > { %v782_v22 = vadd.f32 %v891_v28, %v781_v4  ;;  %v795_v52 = vadd.f32 %v891_v28, %v794_v1 }
 0x1a1   : > { %v951_v53 = vpop.f32.mrf.mxu0  ;;  %v958_v33 = vpop.f32.mrf.mxu1 }
 0x1a2   : > { %803 = vst.msk [vmem:[%s170_s18 + $0x8] sm:$0xff] %vm801_vm13, %v782_v22  ;;  %806 = vst.msk [vmem:[%s170_s18 + $0x20] sm:$0xff] %vm801_vm13, %v795_v52 }
 0x1a3   : > { %v797_v41 = vpop.f32.mrf.mxu1 }
 0x1a4   : > { %v798_v9 = vadd.f32 %v891_v28, %v797_v41 }
 0x1a5   : > { %v959_v59 = vpop.f32.mrf.mxu1 }
 0x1a6   : > { %807 = vst.msk [vmem:[%s170_s18 + $0x28] sm:$0xff] %vm801_vm13, %v798_v9 }
 0x1a7 PF: > { %s13_s12 = sadd.s32 1, %s1007_s12  }
 0x1a8   : > { %p10_p4 = scmp.ge.s32.totalorder %s13_s12, 4  }
 0x1aa   :  { %12 = sbr.rel (!%p10_p4) target bundleno = 1 (0x1), region = 62 }

</bundles_post_ra>
